<compile_context>
chip_gen: v5e
topology: v5e:2x2
jax: 0.10.0
libtpu: 0.0.40
codegen_flags: <defaults>
</compile_context>

<pallas_src>
import functools

import jax
import jax.numpy as jnp
from jax.experimental import pallas as pl
from jax.experimental.pallas import tpu as pltpu


_TARGET_BLOCKS = 4          # >= 2 TensorCores (v7x) x double-buffer overlap
_RAGGED_TILE = 64 * 1024    # lane-chunk (multiple of 128) for the (1, n) path


# ----------------------------------------------------------------------------
# Kernels
# ----------------------------------------------------------------------------
def _minmax_partial_kernel(x_ref, min_ref, max_ref, *, valid_rows, need_mask):
    """Per-block partial min/max over rows -> lane-dense (1, lanes) partials."""
    x = x_ref[...].astype(jnp.float32)
    if need_mask:   # last grid step may hang past the true row count (cdiv grid)
        tile_r = x.shape[0]
        row = (jax.lax.broadcasted_iota(jnp.int32, x.shape, 0)
               + pl.program_id(0) * tile_r)
        valid = row < valid_rows
        x_min = jnp.where(valid, x, jnp.inf)
        x_max = jnp.where(valid, x, -jnp.inf)
    else:
        x_min = x_max = x
    min_ref[...] = jnp.min(x_min, axis=0, keepdims=True)
    max_ref[...] = jnp.max(x_max, axis=0, keepdims=True)


def _quant_kernel(params_ref, x_ref, o_ref):
    """Fake-quant hot path: clip(round(x*inv_delta), -zp, qmax-zp) * delta.

    round_ste forward == round (the STE only matters for gradients).
    """
    delta = params_ref[0]       # scalars from SMEM
    inv_delta = params_ref[1]
    lo = params_ref[2]          # -zero_point
    hi = params_ref[3]          # (n_levels - 1) - zero_point
    x = x_ref[...].astype(jnp.float32)
    q = jnp.clip(jnp.round(x * inv_delta), lo, hi)
    o_ref[...] = (q * delta).astype(o_ref.dtype)


# ----------------------------------------------------------------------------
# Budgets & layout selection
# ----------------------------------------------------------------------------
@functools.lru_cache(maxsize=None)
def _vmem_budget():
    """(block_bytes, vmem_limit_bytes), generation-aware when queryable."""
    big_vmem = False
    try:
        cap = getattr(pltpu.get_tpu_info(), "vmem_capacity_bytes", 0) or 0
        big_vmem = cap >= (96 << 20)          # v5e / v6e: 128 MiB per core
    except Exception:                          # v7x / unknown: stay conservative
        pass
    if big_vmem:
        return 8 << 20, 64 << 20
    return 4 << 20, 40 << 20                   # fits v7x's 64 MiB physical VMEM


def _max_block_elems(itemsize):
    """Largest per-array block (elements) that keeps total VMEM in budget."""
    block_bytes, vmem_limit = _vmem_budget()
    # Per-element VMEM: double-buffered in + out (native dtype) plus ~3
    # full-block f32 temporaries for the elementwise chain; 8 MiB headroom.
    usable = vmem_limit - (8 << 20)
    max_elems = min(block_bytes // itemsize, usable // (4 * itemsize + 12))
    return max_elems, vmem_limit


def _choose_layout(n, max_elems):
    """(rows, lanes, tile_r, nblk) for n elements with n % 128 == 0."""
    lanes = 128
    for cand in (4096, 2048, 1024, 512, 256):
        if n % cand == 0 and n // cand >= 8:   # prefer wide lanes, full sublanes
            lanes = cand
            break
    rows = n // lanes
    budget_r = max(8, (max_elems // lanes) // 8 * 8)
    split_r = ((-(-rows // _TARGET_BLOCKS)) + 7) // 8 * 8     # >= ~4 grid steps
    tile_r = max(8, min(budget_r, split_r))
    if rows <= tile_r:
        tile_r = rows                          # single full-extent block
    nblk = -(-rows // tile_r)
    return rows, lanes, tile_r, nblk


# ----------------------------------------------------------------------------
# Quantizer
# ----------------------------------------------------------------------------
class UniformAffineQuantizerPallas:
    def __init__(self, n_bits: int = 8, symmetric: bool = False,
                 channel_wise: bool = False, scale_method: str = 'max',
                 leaf_param: bool = False, always_zero: bool = False):
        # TODO(synk): symmetric / channel_wise / 'mse' scale-search /
        # leaf_param running-stat branches not implemented (default config only).
        assert not symmetric and not channel_wise and not always_zero \
            and 'max' in scale_method and 'scale' not in scale_method, \
            "only the default (asymmetric, per-tensor, 'max') config is implemented"
        self.n_bits = n_bits
        self.n_levels = 2 ** n_bits
        self.delta = None
        self.zero_point = None
        self._params = None
        self.inited = False
        # TODO(synk): delta/zero_point are cached on the Python object (matches
        # the nn.Module statefulness); do not capture this object inside jax.jit.

    # ---- init_quantization_scale ('max', asymmetric): delta from the RAW
    #      range; zero_point from the zero-clamped min (as in the reference).
    def _set_params(self, x_min_raw, x_max_raw):
        x_min_raw = x_min_raw.astype(jnp.float32)
        x_max_raw = x_max_raw.astype(jnp.float32)
        qmax = jnp.float32(self.n_levels - 1)
        delta = jnp.maximum((x_max_raw - x_min_raw) / qmax, jnp.float32(1e-8))
        x_min = jnp.minimum(x_min_raw, 0.0)
        zero_point = jnp.round(-x_min / delta)
        self.delta = delta
        self.zero_point = zero_point
        # Folded kernel scalars: out = clip(round(x*inv_delta), lo, hi) * delta.
        # TODO(synk): round(x*inv_delta) may differ from round(x/delta) by one
        # level on exact .5 boundaries (1 ULP); acceptable for fake-quant.
        self._params = jnp.stack(
            [delta, 1.0 / delta, -zero_point, qmax - zero_point]
        ).astype(jnp.float32)

    # ---- Pallas kernel 1: lane-dense per-block min/max partials + tiny reduce
    def _min_max(self, x2d, tile_r, lanes, nblk, vmem_limit):
        rows = x2d.shape[0]
        kern = functools.partial(_minmax_partial_kernel,
                                 valid_rows=rows,
                                 need_mask=(nblk * tile_r != rows))
        pmin, pmax = pl.pallas_call(
            kern,
            out_shape=(jax.ShapeDtypeStruct((nblk, lanes), jnp.float32),
                       jax.ShapeDtypeStruct((nblk, lanes), jnp.float32)),
            grid=(nblk,),
            in_specs=[pl.BlockSpec((tile_r, lanes), lambda i: (i, 0))],
            out_specs=(pl.BlockSpec((1, lanes), lambda i: (i, 0)),
                       pl.BlockSpec((1, lanes), lambda i: (i, 0))),
            compiler_params=pltpu.CompilerParams(
                dimension_semantics=("parallel",),
                vmem_limit_bytes=vmem_limit),
        )(x2d)
        return jnp.min(pmin), jnp.max(pmax)

    # ---- Pallas kernel 2: streaming fake-quant (native-dtype I/O)
    def _quant(self, x2d, tile_r, tile_c, vmem_limit):
        rows, cols = x2d.shape
        grid = (-(-rows // tile_r), -(-cols // tile_c))
        return pl.pallas_call(
            _quant_kernel,
            out_shape=jax.ShapeDtypeStruct((rows, cols), x2d.dtype),
            grid=grid,
            in_specs=[pl.BlockSpec(memory_space=pltpu.MemorySpace.SMEM),
                      pl.BlockSpec((tile_r, tile_c), lambda i, j: (i, j))],
            out_specs=pl.BlockSpec((tile_r, tile_c), lambda i, j: (i, j)),
            compiler_params=pltpu.CompilerParams(
                dimension_semantics=("parallel", "parallel"),
                vmem_limit_bytes=vmem_limit),
        )(self._params, x2d)

    def __call__(self, x):
        orig_shape = x.shape
        n = int(x.size)
        flat = x.reshape(-1)                              # free (row-major)
        max_elems, vmem_limit = _max_block_elems(x.dtype.itemsize)

        if n % 128 == 0:
            # Lane-dense fast path: (rows, lanes) slab, row-blocked grid.
            rows, lanes, tile_r, nblk = _choose_layout(n, max_elems)
            x2d = flat.reshape(rows, lanes)
            if not self.inited:
                self._set_params(*self._min_max(x2d, tile_r, lanes, nblk,
                                                vmem_limit))
                self.inited = True
            out2d = self._quant(x2d, tile_r, lanes, vmem_limit)
        else:
            # Ragged fallback: stream a (1, n) slab in 128-multiple lane chunks;
            # Pallas masks the short tail block (no pad / slice-back copies).
            if not self.inited:
                # TODO(synk): ragged init-time min/max uses XLA's reduction
                # (one-time cost) instead of the Pallas partial-reduce kernel.
                self._set_params(jnp.min(flat), jnp.max(flat))
                self.inited = True
            x2d = flat.reshape(1, n)
            tile_c = n if n <= _RAGGED_TILE else _RAGGED_TILE
            out2d = self._quant(x2d, 1, tile_c, vmem_limit)

        return out2d.reshape(orig_shape)


# ----------------------------------------------------------------------------
# Pure-JAX reference (transcribes the PyTorch 'max'/asymmetric forward)
# ----------------------------------------------------------------------------
def _reference(x, n_levels):
    x_min_raw, x_max_raw = jnp.min(x), jnp.max(x)
    x_min = jnp.minimum(x_min_raw, 0.0)
    delta = jnp.maximum((x_max_raw - x_min_raw) / jnp.float32(n_levels - 1),
                        jnp.float32(1e-8))
    zp = jnp.round(-x_min / delta)
    q = jnp.clip(jnp.round(x * (1.0 / delta)) + zp, 0.0, float(n_levels - 1))
    return (q - zp) * delta


# ----------------------------------------------------------------------------
# Self-test
# ----------------------------------------------------------------------------
if __name__ == "__main__":
    # NCHW activation, as a PyTorch conv layer would feed this quantizer.
    x = jax.random.normal(jax.random.PRNGKey(0), (2, 4, 16, 16),
                          dtype=jnp.float32)
    quantizer = UniformAffineQuantizerPallas(n_bits=8)
    y = quantizer(x)
    jax.block_until_ready(y)
    ref = _reference(x, quantizer.n_levels)
    assert y.shape == x.shape and y.dtype == x.dtype
    assert jnp.allclose(y, ref, atol=1e-5, rtol=1e-5), \
        float(jnp.max(jnp.abs(y - ref)))

    # Second call reuses cached delta/zero_point (stateful, like the nn.Module).
    y_again = quantizer(x)
    jax.block_until_ready(y_again)
    assert jnp.allclose(y_again, ref, atol=1e-5, rtol=1e-5)

    # bf16 I/O (exercises the byte-budgeted blocks + native-dtype path).
    xb = jax.random.normal(jax.random.PRNGKey(2), (2, 4, 16, 16),
                           dtype=jnp.float32).astype(jnp.bfloat16)
    qb = UniformAffineQuantizerPallas(n_bits=8)
    yb = qb(xb)
    jax.block_until_ready(yb)
    refb = _reference(xb.astype(jnp.float32), qb.n_levels).astype(jnp.bfloat16)
    assert yb.shape == xb.shape and yb.dtype == xb.dtype
    assert jnp.allclose(yb.astype(jnp.float32), refb.astype(jnp.float32),
                        atol=5e-2)

    # Ragged size (exercises the copy-free masked-tail fallback path).
    x2 = jax.random.normal(jax.random.PRNGKey(1), (2, 3, 5, 7),
                           dtype=jnp.float32)
    quantizer2 = UniformAffineQuantizerPallas(n_bits=8)
    y2 = quantizer2(x2)
    jax.block_until_ready(y2)
    ref2 = _reference(x2, quantizer2.n_levels)
    assert y2.shape == x2.shape and y2.dtype == x2.dtype
    assert jnp.allclose(y2, ref2, atol=1e-5, rtol=1e-5), \
        float(jnp.max(jnp.abs(y2 - ref2)))

    print("KERNEL_OK")
</pallas_src>

<mosaic_0001>
module attributes {stable_mosaic.version = 11 : i64} {
  func.func @_minmax_partial_kernel(%arg0: i32, %arg1: memref<8x256xf32, #tpu.memory_space<vmem>>, %arg2: memref<1x256xf32, #tpu.memory_space<vmem>>, %arg3: memref<1x256xf32, #tpu.memory_space<vmem>>) attributes {dimension_semantics = [#tpu.dimension_semantics<parallel>], iteration_bounds = array<i64: 1>, scalar_prefetch = 0 : i64, scratch_operands = 0 : i64, tpu.core_type = #tpu.core_type<tc>, window_params = [{transform_indices = @transform_0, window_bounds = array<i64: 8, 256>}, {transform_indices = @transform_1, window_bounds = array<i64: 1, 256>}, {transform_indices = @transform_2, window_bounds = array<i64: 1, 256>}]} {
    %c0 = arith.constant 0 : index
    %c0_0 = arith.constant 0 : index
    %0 = vector.load %arg1[%c0, %c0_0] : memref<8x256xf32, #tpu.memory_space<vmem>>, vector<8x256xf32>
    %cst = arith.constant dense<0x7F800000> : vector<256xf32>
    %1 = vector.multi_reduction <minimumf>, %0, %cst [0] : vector<8x256xf32> to vector<256xf32>
    %2 = vector.shape_cast %1 : vector<256xf32> to vector<1x256xf32>
    %c0_1 = arith.constant 0 : index
    %c0_2 = arith.constant 0 : index
    %3 = vector.load %arg2[%c0_1, %c0_2] : memref<1x256xf32, #tpu.memory_space<vmem>>, vector<1x256xf32>
    tpu.vector_store %arg2[%c0_1, %c0_2], %2 {strides = array<i32>} : memref<1x256xf32, #tpu.memory_space<vmem>>, vector<1x256xf32>,
    %cst_3 = arith.constant dense<0xFF800000> : vector<256xf32>
    %4 = vector.multi_reduction <maximumf>, %0, %cst_3 [0] : vector<8x256xf32> to vector<256xf32>
    %5 = vector.shape_cast %4 : vector<256xf32> to vector<1x256xf32>
    %c0_4 = arith.constant 0 : index
    %c0_5 = arith.constant 0 : index
    %6 = vector.load %arg3[%c0_4, %c0_5] : memref<1x256xf32, #tpu.memory_space<vmem>>, vector<1x256xf32>
    tpu.vector_store %arg3[%c0_4, %c0_5], %5 {strides = array<i32>} : memref<1x256xf32, #tpu.memory_space<vmem>>, vector<1x256xf32>,
    return
  }
  func.func @transform_0(%arg0: i32) -> (i32, i32) {
    %c0_i32 = arith.constant 0 : i32
    %c0_i32_0 = arith.constant 0 : i32
    return %arg0, %c0_i32 : i32, i32
  }
  func.func @transform_1(%arg0: i32) -> (i32, i32) {
    %c0_i32 = arith.constant 0 : i32
    %c0_i32_0 = arith.constant 0 : i32
    return %arg0, %c0_i32 : i32, i32
  }
  func.func @transform_2(%arg0: i32) -> (i32, i32) {
    %c0_i32 = arith.constant 0 : i32
    %c0_i32_0 = arith.constant 0 : i32
    return %arg0, %c0_i32 : i32, i32
  }
}

</mosaic_0001>

<bundles_post_ra>
// kernel: tpu_custom_call.1
= control target key start
LH: loop header
LB: loop body
LE: loop exit
PB: predicated region body
PF: predicated region fallthrough
CT: control target
= control target key end

     0   :  { %8 = vsyncpa [#allocation3], 0  ;;  %s210_s0 = inlined_call_operand.hbm [shape: f32[8,256], index: 0, kind: input, shape index: {}]   ;;  %s211_s1 = inlined_call_operand.hbm [shape: f32[1,256], index: 1, kind: output, shape index: {0}]   ;;  %s212_s2 = inlined_call_operand.hbm [shape: f32[1,256], index: 2, kind: output, shape index: {1}]  }
   0x1   :  { %9 = vsyncpa [#allocation4], 0 }
   0x2   :  { %10 = vsyncpa [#allocation7], 0  ;;  %s16_s11 = sshll.u32 %s210_s0, 4  ;;  %s183_s12 = smov [#allocation2]   ;;  %s17_s11 = int_to_ptr.hbm [resolvable:$true] %s16_s11 }
   0x3   :  { %s18_s13 = sshll.u32 %s183_s12, 4  ;;  %s19_s13 = int_to_ptr.vmem [resolvable:$true] %s18_s13 }
   0x4   :  { %21 = dma.hbm_to_vmem [thread:$0]  %s17_s11, 256, %s19_s13, [#allocation3]  }
   0x5   :  { %177 = dma.done.wait [#allocation3], 256  }
   0x6   :  { %178 = vsyncadd [#allocation3], 4294967040  ;;  %v26_v0 = vld [vmem:[#allocation2] sm:$0xff]  ;;  %v27_v1 = vld [vmem:[#allocation2 + $0x8] sm:$0xff]  ;;  %v46_v16 = vlaneseq  ;;  %s184_s0 = smov [#allocation5]   ;;  %s76_s17 = sshll.u32 %s211_s1, 4  ;;  %s77_s17 = int_to_ptr.hbm [resolvable:$true] %s76_s17 }
   0x7   :  { %v28_v2 = vrot.slane %v26_v0, 4  ;;  %v34_v3 = vrot.slane %v27_v1, 4  ;;  %s74_s14 = sshll.u32 %s184_s0, 4  ;;  %vm43_vm0 = vcmask 1040384   ;;  %s185_s18 = smov [#allocation6]   ;;  %s75_s14 = int_to_ptr.vmem [resolvable:$true] %s74_s14 }
   0x8   :  { %s85_s19 = sshll.u32 %s185_s18, 4  ;;  %s87_s22 = sshll.u32 %s212_s2, 4  ;;  %vm48_vm1 = vcmp.lt.s32.totalorder %v46_v16, 256  ;;  %s86_s19 = int_to_ptr.vmem [resolvable:$true] %s85_s19  ;;  %s88_s22 = int_to_ptr.hbm [resolvable:$true] %s87_s22 }
   0x9   :  { %v29_v4 = vmin.f32 %v26_v0, %v28_v2  ;;  %v35_v5 = vmin.f32 %v27_v1, %v34_v3  ;;  %v52_v6 = vmax.f32 %v26_v0, %v28_v2  ;;  %v58_v7 = vmax.f32 %v27_v1, %v34_v3 }
   0xb   :  { %v30_v8 = vrot.slane %v29_v4, 2  ;;  %v36_v9 = vrot.slane %v35_v5, 2  ;;  %v53_v10 = vrot.slane %v52_v6, 2  ;;  %v59_v11 = vrot.slane %v58_v7, 2 }
   0xd   :  { %v31_v12 = vmin.f32 %v29_v4, %v30_v8  ;;  %v37_v13 = vmin.f32 %v35_v5, %v36_v9  ;;  %v54_v14 = vmax.f32 %v52_v6, %v53_v10  ;;  %v60_v15 = vmax.f32 %v58_v7, %v59_v11 }
   0xf   :  { %v32_v17 = vrot.slane %v31_v12, 1  ;;  %v38_v18 = vrot.slane %v37_v13, 1  ;;  %v55_v19 = vrot.slane %v54_v14, 1  ;;  %v61_v20 = vrot.slane %v60_v15, 1 }
  0x11   :  { %v33_v21 = vmin.f32 %v31_v12, %v32_v17  ;;  %v39_v22 = vmin.f32 %v37_v13, %v38_v18  ;;  %v56_v23 = vmax.f32 %v54_v14, %v55_v19  ;;  %v62_v24 = vmax.f32 %v60_v15, %v61_v20 }
  0x13   :  { %v42_v25 = vrot.slane %v39_v22, 7  ;;  %v65_v26 = vrot.slane %v62_v24, 7 }
  0x15   :  { %v44_v27 = vsel %vm43_vm0, %v33_v21, %v42_v25  ;;  %v66_v28 = vsel %vm43_vm0, %v56_v23, %v65_v26 }
  0x16   :  { %50 = vst.msk [vmem:[#allocation5] sm:$0x3] %vm48_vm1, %v44_v27 }
  0x17   :  { %68 = vst.msk [vmem:[#allocation6] sm:$0x3] %vm48_vm1, %v66_v28  ;;  %79 = dma.vmem_to_hbm [thread:$0]  %s75_s14, 32, %s77_s17, [#allocation4]  }
  0x18   :  { %90 = dma.vmem_to_hbm [thread:$0]  %s86_s19, 32, %s88_s22, [#allocation7]  }
  0x19   :  { %179 = dma.done.wait [#allocation4], 32  }
  0x1a   :  { %180 = vsyncadd [#allocation4], 4294967264 }
  0x1b   :  { %181 = dma.done.wait [#allocation7], 32  }
  0x1c   :  { %182 = vsyncadd [#allocation7], 4294967264 }
  0x1d   :  { %99 = vsyncpa [#allocation3], 1 }
  0x1e   :  { %100 = vsyncpa [#allocation4], 1 }
  0x1f   :  { %101 = vsyncpa [#allocation7], 1 }

</bundles_post_ra>
